<compile_context>
chip_gen: v5e
topology: v5e:2x2
jax: 0.10.0
libtpu: 0.0.40
codegen_flags: <defaults>
</compile_context>

<pallas_src>
import functools

import jax
import jax.numpy as jnp
from jax.experimental import pallas as pl
from jax.experimental.pallas import tpu as pltpu


def _silu(x):
    return x * jax.nn.sigmoid(x)


def gcl_edge_kernel(ids_ref, h_ref, we1s_ref, we1t_ref, be1_ref, we2_ref, be2_ref,
                    *refs, emit_edge_feat):
    if emit_edge_feat:
        pagg_ref, edge_feat_ref, hs_ref, ht_ref = refs
    else:
        pagg_ref, hs_ref, ht_ref = refs

    t = pl.program_id(1)
    cdt = hs_ref.dtype                        # MXU operand dtype (bf16)

    # Once per split: fold the first edge-MLP linear into the gather and zero
    # the resident partial-aggregation output block.
    @pl.when(t == 0)
    def _init():
        hc = h_ref[...]                       # already compute dtype
        hs_ref[...] = jnp.dot(hc, we1s_ref[...],
                              preferred_element_type=jnp.float32).astype(cdt)
        ht_ref[...] = jnp.dot(hc, we1t_ref[...],
                              preferred_element_type=jnp.float32).astype(cdt)
        pagg_ref[...] = jnp.zeros_like(pagg_ref)

    ids = ids_ref[...]                        # [tE, 2] int32, -1 marks padding
    tE = ids.shape[0]
    N = h_ref.shape[0]

    # Per-tile one-hot incidence; padded edges (-1) give all-zero rows, so they
    # gather zeros and contribute nothing to the segment sum.
    node_iota = jax.lax.broadcasted_iota(jnp.int32, (tE, N), 1)
    onehot_row = (ids[:, 0:1] == node_iota).astype(cdt)        # [tE, N]
    onehot_col = (ids[:, 1:2] == node_iota).astype(cdt)        # [tE, N]

    # Gather + first linear fused: m = hs[row] + ht[col] + b1  (bf16 in, f32 acc)
    m = jnp.dot(onehot_row, hs_ref[...], preferred_element_type=jnp.float32)
    m = m + jnp.dot(onehot_col, ht_ref[...], preferred_element_type=jnp.float32)
    m = _silu(m + be1_ref[...])
    edge_feat = _silu(jnp.dot(m.astype(cdt), we2_ref[...],
                              preferred_element_type=jnp.float32) + be2_ref[...])

    # unsorted_segment_sum accumulate: contract the edge dim directly
    # (no explicit transpose), into the resident f32 output block.
    pagg_ref[...] += jax.lax.dot_general(
        onehot_row, edge_feat.astype(cdt),
        dimension_numbers=(((0,), (0,)), ((), ())),
        preferred_element_type=jnp.float32)

    if emit_edge_feat:
        edge_feat_ref[...] = edge_feat.astype(edge_feat_ref.dtype)


def gcl_node_kernel(h_ref, pagg_ref, wn1h_ref, wn1a_ref, bn1_ref, wn2_ref, bn2_ref,
                    h_out_ref):
    cdt = wn1h_ref.dtype
    N = h_ref.shape[0]
    S = pagg_ref.shape[0] // N                # tiny static number of splits
    agg = pagg_ref[0:N, :]
    for i in range(1, S):
        agg = agg + pagg_ref[i * N:(i + 1) * N, :]

    h = h_ref[...]                            # f32
    n1 = jnp.dot(h.astype(cdt), wn1h_ref[...], preferred_element_type=jnp.float32)
    n1 = n1 + jnp.dot(agg.astype(cdt), wn1a_ref[...],
                      preferred_element_type=jnp.float32)
    n1 = _silu(n1 + bn1_ref[...])
    out = jnp.dot(n1.astype(cdt), wn2_ref[...],
                  preferred_element_type=jnp.float32) + bn2_ref[...]
    h_out_ref[...] = (h + out).astype(h_out_ref.dtype)        # recurrent residual


def _vmem_cap_bytes():
    try:
        phys = int(pltpu.get_tpu_info().vmem_capacity_bytes)
    except Exception:
        phys = 64 * 2**20                     # conservative (v7x-sized) fallback
    return int(phys * 0.85)                   # leave headroom for compiler scratch


def gcl_forward(h, row, col, params, *, edge_tile=256, num_splits=2,
                compute_dtype=jnp.bfloat16, return_edge_feat=True,
                edge_feat_dtype=None):
    """h: [N, F] float32; row/col: [E] int32; params: dict of [in,out] weights.

    NOTE: h's HBM buffer is aliased into h_out (input_output_aliases); callers
    must not rely on h's contents after this call.
    """
    N, F = h.shape
    E = int(row.shape[0])
    H = params["we2"].shape[1]
    F_out = params["wn2"].shape[1]
    assert F_out == F, "recurrent residual (h + out) requires output_nf == input_nf"
    if edge_feat_dtype is None:
        edge_feat_dtype = compute_dtype

    # Split the concat-layer weights (no lane-axis concats in-kernel) and cast
    # all matmul weights to the MXU dtype; biases stay f32 (added to f32 accum).
    we1_s = params["we1"][:F].astype(compute_dtype)
    we1_t = params["we1"][F:].astype(compute_dtype)
    we2_c = params["we2"].astype(compute_dtype)
    wn1_h = params["wn1"][:F].astype(compute_dtype)
    wn1_a = params["wn1"][F:].astype(compute_dtype)
    wn2_c = params["wn2"].astype(compute_dtype)
    be1, be2 = params["be1"], params["be2"]
    bn1, bn2 = params["bn1"], params["bn2"]

    if E == 0:
        # No edges: agg = 0, but the node MLP is still applied.
        pagg = jnp.zeros((N, H), jnp.float32)
        edge_feat = jnp.zeros((0, H), edge_feat_dtype) if return_edge_feat else None
    else:
        # Edge tiling: tile rounded to 8 sublanes; edges split across
        # `num_splits` independent partial aggregations (v7x megacore).
        tE = max(8, ((min(edge_tile, E) + 7) // 8) * 8)
        total_tiles = -(-E // tE)
        S = max(1, min(num_splits, total_tiles))
        tiles_per_split = -(-total_tiles // S)
        E_pad = S * tiles_per_split * tE
        pad = E_pad - E

        row_p = row.astype(jnp.int32)
        col_p = col.astype(jnp.int32)
        if pad:
            fill = jnp.full((pad,), -1, jnp.int32)
            row_p = jnp.concatenate([row_p, fill])
            col_p = jnp.concatenate([col_p, fill])
        ids = jnp.stack([row_p, col_p], axis=1)          # [E_pad, 2]
        h_c = h.astype(compute_dtype)

        in_specs = [
            pl.BlockSpec((tE, 2), lambda s, t: (s * tiles_per_split + t, 0)),
            pl.BlockSpec((N, F), lambda s, t: (0, 0)),           # h (resident)
        ] + [pl.BlockSpec(w.shape, lambda s, t: (0, 0))
             for w in (we1_s, we1_t, be1, we2_c, be2)]           # weights/biases

        pagg_spec = pl.BlockSpec((N, H), lambda s, t: (s, 0))    # resident per split
        pagg_shape = jax.ShapeDtypeStruct((S * N, H), jnp.float32)
        if return_edge_feat:
            out_specs = (pagg_spec,
                         pl.BlockSpec((tE, H),
                                      lambda s, t: (s * tiles_per_split + t, 0)))
            out_shape = (pagg_shape,
                         jax.ShapeDtypeStruct((E_pad, H), edge_feat_dtype))
        else:
            out_specs = pagg_spec
            out_shape = pagg_shape

        # VMEM budget from actual buffer counts (+2x headroom), capped at 85%
        # of physical VMEM (so v7x keeps headroom, v5e/v6e can exceed 64 MiB).
        bpe = jnp.dtype(compute_dtype).itemsize
        ef_b = jnp.dtype(edge_feat_dtype).itemsize if return_edge_feat else 0
        est = (
            N * F * bpe                         # h (resident)
            + (2 * F * H + H * H) * bpe         # edge-MLP weights (resident)
            + 2 * H * 4                         # biases
            + 2 * N * H * bpe                   # hs/ht scratch
            + 2 * N * H * 4                     # partial-agg output block
            + 2 * tE * 2 * 4                    # id tiles (double-buffered)
            + 2 * tE * H * ef_b                 # edge_feat tiles (double-buffered)
            + 2 * tE * N * bpe                  # one-hot temporaries
            + 4 * tE * H * 4                    # f32 activation temporaries
            + N * H * 4                         # segment-sum partial
        )
        vmem_limit = int(min(max(2 * est, 32 * 2**20), _vmem_cap_bytes()))

        kernel = functools.partial(gcl_edge_kernel, emit_edge_feat=return_edge_feat)
        result = pl.pallas_call(
            kernel,
            grid_spec=pltpu.PrefetchScalarGridSpec(
                num_scalar_prefetch=0,
                grid=(S, tiles_per_split),
                in_specs=in_specs,
                out_specs=out_specs,
                scratch_shapes=[pltpu.VMEM((N, H), compute_dtype),
                                pltpu.VMEM((N, H), compute_dtype)]),
            out_shape=out_shape,
            compiler_params=pltpu.CompilerParams(
                dimension_semantics=("parallel", "arbitrary"),
                vmem_limit_bytes=vmem_limit),
        )(ids, h_c, we1_s, we1_t, be1, we2_c, be2)

        if return_edge_feat:
            pagg, ef_pad = result
            edge_feat = ef_pad[:E]
        else:
            pagg = result
            edge_feat = None

    # Node MLP + residual as a tiny single-step kernel (kept out of the edge
    # loop so the parallel split stays clean). h's buffer is reused for h_out.
    h_out = pl.pallas_call(
        gcl_node_kernel,
        out_shape=jax.ShapeDtypeStruct((N, F_out), h.dtype),
        grid=(1,),
        in_specs=[
            pl.BlockSpec((N, F), lambda i: (0, 0)),
            pl.BlockSpec(pagg.shape, lambda i: (0, 0)),
            pl.BlockSpec((F, H), lambda i: (0, 0)),
            pl.BlockSpec((H, H), lambda i: (0, 0)),
            pl.BlockSpec((1, H), lambda i: (0, 0)),
            pl.BlockSpec((H, F_out), lambda i: (0, 0)),
            pl.BlockSpec((1, F_out), lambda i: (0, 0)),
        ],
        out_specs=pl.BlockSpec((N, F_out), lambda i: (0, 0)),
        compiler_params=pltpu.CompilerParams(dimension_semantics=("arbitrary",)),
        input_output_aliases={0: 0},
    )(h, pagg, wn1_h, wn1_a, bn1, wn2_c, bn2)

    return h_out, edge_feat


def init_params(key, input_nf, output_nf, hidden_nf):
    """Deterministic Linear params; weights stored as [in, out] (torch W^T)."""
    input_edge = 2 * input_nf

    def linear(key, fan_in, fan_out):
        k_w, k_b = jax.random.split(key)
        bound = 1.0 / jnp.sqrt(fan_in)
        w = jax.random.uniform(k_w, (fan_in, fan_out), jnp.float32, -bound, bound)
        b = jax.random.uniform(k_b, (1, fan_out), jnp.float32, -bound, bound)
        return w, b

    k1, k2, k3, k4 = jax.random.split(key, 4)
    we1, be1 = linear(k1, input_edge, hidden_nf)
    we2, be2 = linear(k2, hidden_nf, hidden_nf)
    wn1, bn1 = linear(k3, hidden_nf + input_nf, hidden_nf)
    wn2, bn2 = linear(k4, hidden_nf, output_nf)
    return dict(we1=we1, be1=be1, we2=we2, be2=be2,
                wn1=wn1, bn1=bn1, wn2=wn2, bn2=bn2)


def gcl_reference(h, row, col, params):
    """Pure-JAX f32 reference mirroring the PyTorch forward."""
    source, target = h[row], h[col]
    edge_in = jnp.concatenate([source, target], axis=1)
    m = jax.nn.silu(edge_in @ params["we1"] + params["be1"])
    edge_feat = jax.nn.silu(m @ params["we2"] + params["be2"])
    agg = jnp.zeros((h.shape[0], edge_feat.shape[1]), edge_feat.dtype).at[row].add(edge_feat)
    node_in = jnp.concatenate([h, agg], axis=1)
    n1 = jax.nn.silu(node_in @ params["wn1"] + params["bn1"])
    out = n1 @ params["wn2"] + params["bn2"]
    return h + out, edge_feat


if __name__ == "__main__":
    # 16 nodes, input_nf = output_nf = hidden_nf = 128 (lane-dense feature dims);
    # fully-connected graph without self-loops -> E = 16*15 = 240 edges.
    # edge_tile=64, num_splits=2 -> E padded to 256 -> 2x2 grid (exercises the
    # per-split accumulator, the parallel split axis, and edge padding).
    N, F, H = 16, 128, 128
    key = jax.random.PRNGKey(0)
    k_h, k_p = jax.random.split(key)

    h = jax.random.normal(k_h, (N, F), jnp.float32)
    rows, cols = [], []
    for i in range(N):
        for j in range(N):
            if i != j:
                rows.append(i)
                cols.append(j)
    row = jnp.asarray(rows, dtype=jnp.int32)
    col = jnp.asarray(cols, dtype=jnp.int32)

    params = init_params(k_p, F, F, H)

    # Compute the reference before the kernel call (h's HBM buffer is aliased
    # into the node kernel's h_out output).
    h_ref_out, ef_ref = gcl_reference(h, row, col, params)
    jax.block_until_ready((h_ref_out, ef_ref))

    h_out, edge_feat = gcl_forward(h, row, col, params,
                                   edge_tile=64, num_splits=2,
                                   return_edge_feat=True)
    jax.block_until_ready((h_out, edge_feat))

    assert h_out.shape == (N, F) and edge_feat.shape == (row.shape[0], H)
    # bf16 MXU operands / f32 accumulation vs. pure-f32 reference -> loose tol.
    assert jnp.allclose(h_out, h_ref_out, atol=5e-2, rtol=5e-2), "node output mismatch"
    assert jnp.allclose(edge_feat.astype(jnp.float32), ef_ref,
                        atol=5e-2, rtol=5e-2), "edge feature mismatch"

    print("KERNEL_OK")
</pallas_src>

<mosaic_0001>
module attributes {stable_mosaic.version = 11 : i64} {
  func.func @gcl_edge_kernel(%arg0: i32, %arg1: i32, %arg2: memref<64x2xi32, #tpu.memory_space<vmem>>, %arg3: memref<16x128xbf16, #tpu.memory_space<vmem>>, %arg4: memref<128x128xbf16, #tpu.memory_space<vmem>>, %arg5: memref<128x128xbf16, #tpu.memory_space<vmem>>, %arg6: memref<1x128xf32, #tpu.memory_space<vmem>>, %arg7: memref<128x128xbf16, #tpu.memory_space<vmem>>, %arg8: memref<1x128xf32, #tpu.memory_space<vmem>>, %arg9: memref<16x128xf32, #tpu.memory_space<vmem>>, %arg10: memref<64x128xbf16, #tpu.memory_space<vmem>>, %arg11: memref<16x128xbf16, #tpu.memory_space<vmem>>, %arg12: memref<16x128xbf16, #tpu.memory_space<vmem>>) attributes {dimension_semantics = [#tpu.dimension_semantics<parallel>, #tpu.dimension_semantics<arbitrary>], iteration_bounds = array<i64: 2, 2>, scalar_prefetch = 0 : i64, scratch_operands = 2 : i64, tpu.core_type = #tpu.core_type<tc>, window_params = [{transform_indices = @transform_0, window_bounds = array<i64: 64, 2>}, {pipeline_mode = #tpu.pipeline_mode<synchronous>, transform_indices = @transform_1, window_bounds = array<i64: 16, 128>}, {pipeline_mode = #tpu.pipeline_mode<synchronous>, transform_indices = @transform_2, window_bounds = array<i64: 128, 128>}, {pipeline_mode = #tpu.pipeline_mode<synchronous>, transform_indices = @transform_3, window_bounds = array<i64: 128, 128>}, {pipeline_mode = #tpu.pipeline_mode<synchronous>, transform_indices = @transform_4, window_bounds = array<i64: 1, 128>}, {pipeline_mode = #tpu.pipeline_mode<synchronous>, transform_indices = @transform_5, window_bounds = array<i64: 128, 128>}, {pipeline_mode = #tpu.pipeline_mode<synchronous>, transform_indices = @transform_6, window_bounds = array<i64: 1, 128>}, {transform_indices = @transform_7, window_bounds = array<i64: 16, 128>}, {transform_indices = @transform_8, window_bounds = array<i64: 64, 128>}]} {
    %c0_i32 = arith.constant 0 : i32
    %0 = arith.cmpi eq, %arg1, %c0_i32 : i32
    %1 = arith.extui %0 : i1 to i32
    %c0_i32_0 = arith.constant 0 : i32
    %2 = arith.cmpi ne, %1, %c0_i32_0 : i32
    scf.if %2 {
      %c0_23 = arith.constant 0 : index
      %c0_24 = arith.constant 0 : index
      %50 = vector.load %arg3[%c0_23, %c0_24] : memref<16x128xbf16, #tpu.memory_space<vmem>>, vector<16x128xbf16>
      %c0_25 = arith.constant 0 : index
      %c0_26 = arith.constant 0 : index
      %51 = vector.load %arg4[%c0_25, %c0_26] : memref<128x128xbf16, #tpu.memory_space<vmem>>, vector<128x128xbf16>
      %cst_27 = arith.constant dense<0.000000e+00> : vector<16x128xf32>
      %52 = tpu.matmul %50, %51, %cst_27 {dimension_numbers = #tpu.dot_dimension_numbers<[1], [0], [0], [1], [0, 0, 1, 1], [], []>} : vector<16x128xbf16>, vector<128x128xbf16>, vector<16x128xf32> -> vector<16x128xf32>
      %53 = arith.truncf %52 : vector<16x128xf32> to vector<16x128xbf16>
      %c0_28 = arith.constant 0 : index
      %c0_29 = arith.constant 0 : index
      %54 = vector.load %arg11[%c0_28, %c0_29] : memref<16x128xbf16, #tpu.memory_space<vmem>>, vector<16x128xbf16>
      tpu.vector_store %arg11[%c0_28, %c0_29], %53 {strides = array<i32>} : memref<16x128xbf16, #tpu.memory_space<vmem>>, vector<16x128xbf16>,
      %c0_30 = arith.constant 0 : index
      %c0_31 = arith.constant 0 : index
      %55 = vector.load %arg5[%c0_30, %c0_31] : memref<128x128xbf16, #tpu.memory_space<vmem>>, vector<128x128xbf16>
      %cst_32 = arith.constant dense<0.000000e+00> : vector<16x128xf32>
      %56 = tpu.matmul %50, %55, %cst_32 {dimension_numbers = #tpu.dot_dimension_numbers<[1], [0], [0], [1], [0, 0, 1, 1], [], []>} : vector<16x128xbf16>, vector<128x128xbf16>, vector<16x128xf32> -> vector<16x128xf32>
      %57 = arith.truncf %56 : vector<16x128xf32> to vector<16x128xbf16>
      %c0_33 = arith.constant 0 : index
      %c0_34 = arith.constant 0 : index
      %58 = vector.load %arg12[%c0_33, %c0_34] : memref<16x128xbf16, #tpu.memory_space<vmem>>, vector<16x128xbf16>
      tpu.vector_store %arg12[%c0_33, %c0_34], %57 {strides = array<i32>} : memref<16x128xbf16, #tpu.memory_space<vmem>>, vector<16x128xbf16>,
      %cst_35 = arith.constant 0.000000e+00 : f32
      %59 = vector.broadcast %cst_35 : f32 to vector<16x128xf32>
      %c0_36 = arith.constant 0 : index
      %c0_37 = arith.constant 0 : index
      %60 = vector.load %arg9[%c0_36, %c0_37] : memref<16x128xf32, #tpu.memory_space<vmem>>, vector<16x128xf32>
      tpu.vector_store %arg9[%c0_36, %c0_37], %59 {strides = array<i32>} : memref<16x128xf32, #tpu.memory_space<vmem>>, vector<16x128xf32>,
    } else {
    }
    %c0 = arith.constant 0 : index
    %c0_1 = arith.constant 0 : index
    %3 = vector.load %arg2[%c0, %c0_1] : memref<64x2xi32, #tpu.memory_space<vmem>>, vector<64x2xi32>
    %4 = tpu.iota {dimensions = array<i32: 1>} : vector<64x16xi32>
    %5 = vector.extract_strided_slice %3 {offsets = [0, 0], sizes = [64, 1], strides = [1, 1]} : vector<64x2xi32> to vector<64x1xi32>
    %6 = vector.broadcast %5 : vector<64x1xi32> to vector<64x16xi32>
    %7 = arith.cmpi eq, %6, %4 : vector<64x16xi32>
    %8 = arith.extui %7 : vector<64x16xi1> to vector<64x16xi32>
    %9 = arith.sitofp %8 : vector<64x16xi32> to vector<64x16xf32>
    %10 = arith.truncf %9 : vector<64x16xf32> to vector<64x16xbf16>
    %11 = vector.extract_strided_slice %3 {offsets = [0, 1], sizes = [64, 1], strides = [1, 1]} : vector<64x2xi32> to vector<64x1xi32>
    %12 = vector.broadcast %11 : vector<64x1xi32> to vector<64x16xi32>
    %13 = arith.cmpi eq, %12, %4 : vector<64x16xi32>
    %14 = arith.extui %13 : vector<64x16xi1> to vector<64x16xi32>
    %15 = arith.sitofp %14 : vector<64x16xi32> to vector<64x16xf32>
    %16 = arith.truncf %15 : vector<64x16xf32> to vector<64x16xbf16>
    %c0_2 = arith.constant 0 : index
    %c0_3 = arith.constant 0 : index
    %17 = vector.load %arg11[%c0_2, %c0_3] : memref<16x128xbf16, #tpu.memory_space<vmem>>, vector<16x128xbf16>
    %cst = arith.constant dense<0.000000e+00> : vector<64x128xf32>
    %18 = tpu.matmul %10, %17, %cst {dimension_numbers = #tpu.dot_dimension_numbers<[1], [0], [0], [1], [0, 0, 1, 1], [], []>} : vector<64x16xbf16>, vector<16x128xbf16>, vector<64x128xf32> -> vector<64x128xf32>
    %c0_4 = arith.constant 0 : index
    %c0_5 = arith.constant 0 : index
    %19 = vector.load %arg12[%c0_4, %c0_5] : memref<16x128xbf16, #tpu.memory_space<vmem>>, vector<16x128xbf16>
    %cst_6 = arith.constant dense<0.000000e+00> : vector<64x128xf32>
    %20 = tpu.matmul %16, %19, %cst_6 {dimension_numbers = #tpu.dot_dimension_numbers<[1], [0], [0], [1], [0, 0, 1, 1], [], []>} : vector<64x16xbf16>, vector<16x128xbf16>, vector<64x128xf32> -> vector<64x128xf32>
    %21 = arith.addf %18, %20 : vector<64x128xf32>
    %c0_7 = arith.constant 0 : index
    %c0_8 = arith.constant 0 : index
    %22 = vector.load %arg6[%c0_7, %c0_8] : memref<1x128xf32, #tpu.memory_space<vmem>>, vector<1x128xf32>
    %23 = vector.broadcast %22 : vector<1x128xf32> to vector<64x128xf32>
    %24 = arith.addf %21, %23 : vector<64x128xf32>
    %25 = arith.negf %24 : vector<64x128xf32>
    %26 = math.exp %25 : vector<64x128xf32>
    %cst_9 = arith.constant 1.000000e+00 : f32
    %27 = vector.broadcast %cst_9 : f32 to vector<64x128xf32>
    %28 = arith.addf %27, %26 : vector<64x128xf32>
    %29 = arith.divf %27, %28 : vector<64x128xf32>
    %30 = arith.mulf %24, %29 : vector<64x128xf32>
    %31 = arith.truncf %30 : vector<64x128xf32> to vector<64x128xbf16>
    %c0_10 = arith.constant 0 : index
    %c0_11 = arith.constant 0 : index
    %32 = vector.load %arg7[%c0_10, %c0_11] : memref<128x128xbf16, #tpu.memory_space<vmem>>, vector<128x128xbf16>
    %cst_12 = arith.constant dense<0.000000e+00> : vector<64x128xf32>
    %33 = tpu.matmul %31, %32, %cst_12 {dimension_numbers = #tpu.dot_dimension_numbers<[1], [0], [0], [1], [0, 0, 1, 1], [], []>} : vector<64x128xbf16>, vector<128x128xbf16>, vector<64x128xf32> -> vector<64x128xf32>
    %c0_13 = arith.constant 0 : index
    %c0_14 = arith.constant 0 : index
    %34 = vector.load %arg8[%c0_13, %c0_14] : memref<1x128xf32, #tpu.memory_space<vmem>>, vector<1x128xf32>
    %35 = vector.broadcast %34 : vector<1x128xf32> to vector<64x128xf32>
    %36 = arith.addf %33, %35 : vector<64x128xf32>
    %37 = arith.negf %36 : vector<64x128xf32>
    %38 = math.exp %37 : vector<64x128xf32>
    %cst_15 = arith.constant 1.000000e+00 : f32
    %39 = vector.broadcast %cst_15 : f32 to vector<64x128xf32>
    %40 = arith.addf %39, %38 : vector<64x128xf32>
    %41 = arith.divf %39, %40 : vector<64x128xf32>
    %42 = arith.mulf %36, %41 : vector<64x128xf32>
    %c0_16 = arith.constant 0 : index
    %c0_17 = arith.constant 0 : index
    %43 = vector.load %arg9[%c0_16, %c0_17] : memref<16x128xf32, #tpu.memory_space<vmem>>, vector<16x128xf32>
    %44 = arith.truncf %42 : vector<64x128xf32> to vector<64x128xbf16>
    %cst_18 = arith.constant dense<0.000000e+00> : vector<16x128xf32>
    %45 = tpu.matmul %10, %44, %cst_18 {dimension_numbers = #tpu.dot_dimension_numbers<[0], [0], [1], [1], [0, 1, 1, 1], [], []>} : vector<64x16xbf16>, vector<64x128xbf16>, vector<16x128xf32> -> vector<16x128xf32>
    %46 = arith.addf %43, %45 : vector<16x128xf32>
    %c0_19 = arith.constant 0 : index
    %c0_20 = arith.constant 0 : index
    %47 = vector.load %arg9[%c0_19, %c0_20] : memref<16x128xf32, #tpu.memory_space<vmem>>, vector<16x128xf32>
    tpu.vector_store %arg9[%c0_19, %c0_20], %46 {strides = array<i32>} : memref<16x128xf32, #tpu.memory_space<vmem>>, vector<16x128xf32>,
    %48 = arith.truncf %42 : vector<64x128xf32> to vector<64x128xbf16>
    %c0_21 = arith.constant 0 : index
    %c0_22 = arith.constant 0 : index
    %49 = vector.load %arg10[%c0_21, %c0_22] : memref<64x128xbf16, #tpu.memory_space<vmem>>, vector<64x128xbf16>
    tpu.vector_store %arg10[%c0_21, %c0_22], %48 {strides = array<i32>} : memref<64x128xbf16, #tpu.memory_space<vmem>>, vector<64x128xbf16>,
    return
  }
  func.func @transform_0(%arg0: i32, %arg1: i32) -> (i32, i32) {
    %c2_i32 = arith.constant 2 : i32
    %0 = arith.muli %arg0, %c2_i32 : i32
    %1 = arith.addi %0, %arg1 : i32
    %c0_i32 = arith.constant 0 : i32
    %c0_i32_0 = arith.constant 0 : i32
    return %1, %c0_i32 : i32, i32
  }
  func.func @transform_1(%arg0: i32, %arg1: i32) -> (i32, i32) {
    %c0_i32 = arith.constant 0 : i32
    %c0_i32_0 = arith.constant 0 : i32
    %c0_i32_1 = arith.constant 0 : i32
    return %c0_i32, %c0_i32_0 : i32, i32
  }
  func.func @transform_2(%arg0: i32, %arg1: i32) -> (i32, i32) {
    %c0_i32 = arith.constant 0 : i32
    %c0_i32_0 = arith.constant 0 : i32
    %c0_i32_1 = arith.constant 0 : i32
    return %c0_i32, %c0_i32_0 : i32, i32
  }
  func.func @transform_3(%arg0: i32, %arg1: i32) -> (i32, i32) {
    %c0_i32 = arith.constant 0 : i32
    %c0_i32_0 = arith.constant 0 : i32
    %c0_i32_1 = arith.constant 0 : i32
    return %c0_i32, %c0_i32_0 : i32, i32
  }
  func.func @transform_4(%arg0: i32, %arg1: i32) -> (i32, i32) {
    %c0_i32 = arith.constant 0 : i32
    %c0_i32_0 = arith.constant 0 : i32
    %c0_i32_1 = arith.constant 0 : i32
    return %c0_i32, %c0_i32_0 : i32, i32
  }
  func.func @transform_5(%arg0: i32, %arg1: i32) -> (i32, i32) {
    %c0_i32 = arith.constant 0 : i32
    %c0_i32_0 = arith.constant 0 : i32
    %c0_i32_1 = arith.constant 0 : i32
    return %c0_i32, %c0_i32_0 : i32, i32
  }
  func.func @transform_6(%arg0: i32, %arg1: i32) -> (i32, i32) {
    %c0_i32 = arith.constant 0 : i32
    %c0_i32_0 = arith.constant 0 : i32
    %c0_i32_1 = arith.constant 0 : i32
    return %c0_i32, %c0_i32_0 : i32, i32
  }
  func.func @transform_7(%arg0: i32, %arg1: i32) -> (i32, i32) {
    %c0_i32 = arith.constant 0 : i32
    %c0_i32_0 = arith.constant 0 : i32
    return %arg0, %c0_i32 : i32, i32
  }
  func.func @transform_8(%arg0: i32, %arg1: i32) -> (i32, i32) {
    %c2_i32 = arith.constant 2 : i32
    %0 = arith.muli %arg0, %c2_i32 : i32
    %1 = arith.addi %0, %arg1 : i32
    %c0_i32 = arith.constant 0 : i32
    %c0_i32_0 = arith.constant 0 : i32
    return %1, %c0_i32 : i32, i32
  }
}

</mosaic_0001>

<bundles_post_ra>
// kernel: tpu_custom_call.1
= control target key start
LH: loop header
LB: loop body
LE: loop exit
PB: predicated region body
PF: predicated region fallthrough
CT: control target
= control target key end

     0   :  { %s2522_s0 = inlined_call_operand.vmem [shape: s32[256,2], index: 0, kind: input, shape index: {}]   ;;  %s2523_s1 = inlined_call_operand.vmem [shape: bf16[16,128], index: 1, kind: input, shape index: {}]   ;;  %s2524_s2 = inlined_call_operand.vmem [shape: bf16[128,128], index: 2, kind: input, shape index: {}]   ;;  %s2525_s3 = inlined_call_operand.vmem [shape: bf16[128,128], index: 3, kind: input, shape index: {}]   ;;  %s2526_s4 = inlined_call_operand.vmem [shape: f32[1,128], index: 4, kind: input, shape index: {}]   ;;  %s2527_s5 = inlined_call_operand.vmem [shape: bf16[128,128], index: 5, kind: input, shape index: {}]   ;;  %s2528_s6 = inlined_call_operand.vmem [shape: f32[1,128], index: 6, kind: input, shape index: {}]   ;;  %s2529_s7 = inlined_call_operand.hbm [shape: f32[32,128], index: 7, kind: output, shape index: {0}]   ;;  %s2530_s8 = inlined_call_operand.hbm [shape: bf16[256,128], index: 8, kind: output, shape index: {1}]  }
   0x1   :  { %2542 = sst [smem:[#allocation17_spill]] %s2522_s0 }
   0x2   :  { %2543 = sst [smem:[#allocation18_spill]] %s2523_s1 }
   0x3   :  { %2544 = sst [smem:[#allocation19_spill]] %s2526_s4 }
   0x4   :  { %2545 = sst [smem:[#allocation20_spill]] %s2528_s6 }
   0x5   :  { %2546 = sst [smem:[#allocation21_spill]] %s2529_s7 }
   0x6   :  { %2547 = sst [smem:[#allocation22_spill]] %s2530_s8 }
   0x7   :  { %14 = vsyncpa [#allocation5], 0 }
   0x8   :  { %16 = vsyncpa [#allocation5 + $0x1], 0 }
   0x9   :  { %17 = vsyncpa [#allocation7], 0 }
   0xa   :  { %19 = vsyncpa [#allocation7 + $0x1], 0  ;;  %s2034_s27 = smov 0   ;;  %s2036_s28 = smov 0  }
   0xb   :  { %s2038_s29 = smov 0   ;;  %s2040_s30 = smov 0  }
   0xc   :  { %s2042_s9 = smov 0   ;;  %s2044_s10 = smov 0  }
   0xd   :  { %s2046_s11 = smov 0   ;;  %s2048_s12 = smov 0  }
   0xe   :  { %s2050_s13 = smov 0   ;;  %s2052_s14 = smov 0  }
   0xf   :  { %s2054_s15 = smov 0  }
  0x10 LB: > { %2548 = sst [smem:[#allocation10_spill]] %s1951_s30  ;;  %s1404_s16 = sadd.s32 4294967295, %s1979_s15   ;;  %s1979_s15 = sphi %s2054_s15, %s25_s15   ;;  %s1975_s14 = sphi %s2052_s14, %s2584_s14   ;;  %s1971_s13 = sphi %s2050_s13, %s2583_s13   ;;  %s1967_s12 = sphi %s2048_s12, %s2582_s12   ;;  %s1963_s11 = sphi %s2046_s11, %s2581_s11   ;;  %s1959_s10 = sphi %s2044_s10, %s2590_s10   ;;  %s1955_s9 = sphi %s2042_s9, %s2589_s9   ;;  %s1951_s30 = sphi %s2040_s30, %s2588_s30   ;;  %s1947_s29 = sphi %s2038_s29, %s2587_s29   ;;  %s1943_s28 = sphi %s2036_s28, %s2586_s28   ;;  %s1939_s27 = sphi %s2034_s27, %s2585_s27  }
  0x11   : > { %2549 = sst [smem:[#allocation11_spill]] %s1971_s13  ;;  %s1405_s17 = sadd.s32 4294967294, %s1979_s15  }
  0x12   : > { %2550 = sst [smem:[#allocation12_spill]] %s1975_s14  ;;  %s34_s18 = sadd.s32 1, %s1971_s13 }
  0x13   : > { %s37_s19 = sadd.s32 1, %s1975_s14  ;;  %p35_p0 = scmp.ge.s32.totalorder %s34_s18, 2 }
  0x14   : > { %s200_s20 = sadd.s32 1, %s1959_s10  ;;  %p210_p1 = scmp.ne.s32.totalorder %s1959_s10, %s1955_s9 }
  0x15   : > { %p2096_p2 = scmp.eq.s32.totalorder %s1404_s16, 3  ;;  %s2592_s18 = smov (%p35_p0, %s34_s18), 0 }
  0x16   : > { %2552 = sst [smem:[#allocation13_spill]] %s2592_s18  ;;  %s2594_s19 = smov (!%p35_p0, %s37_s19), %s1975_s14 }
  0x17   : > { %p2105_p3 = por %p2096_p2, %p210_p1  ;;  %p216_p4 = scmp.ne.s32.totalorder %s1955_s9, %s1951_s30 }
  0x18   : > { %p39_p5 = scmp.ge.s32.totalorder %s2594_s19, 2  ;;  %p2111_p6 = scmp.eq.s32.totalorder %s1405_s17, 3 }
  0x19   : > { %s2553_s22 = scalar_select %p2105_p3, 1, 0 }
  0x1a   : > { %s1408_s24 = sshll.u32 %s1975_s14, 1  ;;  %s230_s25 = sadd.s32 1, %s1947_s29 }
  0x1b   : > { %2554 = sst [smem:[#allocation14_spill]] %s2553_s22  ;;  %s2596_s19 = smov (%p39_p5, %s2594_s19), 0 }
  0x1c   : > { %2556 = sst [smem:[#allocation15_spill]] %s2596_s19  ;;  %p2121_p7 = por %p2111_p6, %p216_p4 }
  0x1d   : > { %s224_s16 = sadd.s32 %s1971_s13, %s1408_s24  ;;  %s197_s17 = ssub.s32 %s1975_s14, %s2596_s19 }
  0x1e   : > { %s1409_s30 = sshll.u32 %s2596_s19, 1  ;;  %p198_p8 = scmp.eq.s32.totalorder %s197_s17, 0 }
  0x1f   : > { %s226_s22 = sadd.s32 %s1409_s30, %s2592_s18  ;;  %p240_p9 = scmp.ne.s32.totalorder %s1947_s29, %s1943_s28 }
  0x20   : > { %s227_s7 = ssub.s32 %s224_s16, %s226_s22  ;;  %p246_p12 = scmp.ne.s32.totalorder %s1943_s28, %s1939_s27 }
  0x21   : > { %s2133_s8 = scalar_select %p198_p8, %s1959_s10, %s200_s20  }
  0x22   : > { %p228_p10 = scmp.eq.s32.totalorder %s227_s7, 0  ;;  %p2137_p11 = por %p240_p9, %p2096_p2 }
  0x23   : > { %2558 = sst [smem:[#allocation16_spill]] %s2133_s8  ;;  %p1412_p13 = scmp.ge.s32.totalorder %s1979_s15, 1 }
  0x24   : > { %s2145_s4 = scalar_select %p228_p10, %s1947_s29, %s230_s25  }
  0x25   : > { %p2149_p0 = por %p246_p12, %p2111_p6  ;;  %p296_p1 = scmp.lt.s32.totalorder %s1979_s15, 5 }
  0x27   : > { %p297_p4 = pnand %p1412_p13, %p296_p1 }
  0x28   : > { %s2540_s7 = sand.u32 (!%p297_p4), 1, %s1955_s9   ;;  %s2541_s30 = sand.u32 (!%p297_p4), 1, %s1943_s28  }
  0x29   : > { %300 = sbr.rel (%p297_p4) target bundleno = 910 (0x38e), region = 48  ;;  %s1413_s20 = sshll.u32 (!%p297_p4), %s2540_s7, 4 }
  0x2a   : > { %s1414_s21 = sshll.u32 (!%p297_p4), %s2541_s30, 5  ;;  %s1415_s22 = sshll.u32 (!%p297_p4), %s1967_s12, 1 }
  0x2b   : > { %s2162_s23 = sadd.s32 (!%p297_p4), %s1963_s11, %s1415_s22  ;;  %s2561_s0 = sld [smem:[#allocation17_spill]] (!%p297_p4) }
  0x2c   : > { %s1416_s25 = sshll.u32 (!%p297_p4), %s2162_s23, 3  ;;  %s2170_s14 = scalar_lea.vmem (!%p297_p4), [#allocation4], %s1413_s20 }
  0x2d   : > { %p340_p2 = scmp.lt.s32.totalorder (!%p297_p4), %s1416_s25, 31  ;;  %s2172_s13 = scalar_lea.vmem (!%p297_p4), [#allocation6], %s1414_s21 }
  0x2e   : > { %p1418_p5 = scmp.ne.s32.totalorder %s1963_s11, 0 }
  0x2f   : > { %s2598_s25 = smov (!%p340_p2, %s1416_s25), 31  ;;  %s2562_s1 = sld [smem:[#allocation18_spill]] (!%p1418_p5) }
  0x30   : > { %s1417_s16 = sshll.u32 %s2598_s25, 3  ;;  %355 = sbr.rel (%p1418_p5) target bundleno = 223 (0xdf), region = 52 }
  0x31   : > { %s2168_s18 = scalar_lea.vmem %s2561_s0, %s1417_s16 }
  0x35   : > { %v1585_v0 = vld [vmem:[%s2524_s2 + $0x38] sm:$0xff]  ;;  %v1584_v2 = vld [vmem:[%s2524_s2 + $0x30] sm:$0xff]  ;;  %v1583_v4 = vld [vmem:[%s2524_s2 + $0x28] sm:$0xff]  ;;  %v1981_v17 = vmov 0.0  }
  0x36   : > { %v1593_v1 = vld [vmem:[%s2525_s3 + $0x38] sm:$0xff]  ;;  %428 = vmatpush.bf16.msra.mxu0 %v1585_v0  ;;  %v1592_v3 = vld [vmem:[%s2525_s3 + $0x30] sm:$0xff]  ;;  %v1591_v5 = vld [vmem:[%s2525_s3 + $0x28] sm:$0xff]  ;;  %528 = vst [vmem:[%s2170_s14] sm:$0xff] %v1981_v17 }
  0x37   : > { %510 = vmatpush.bf16.msra.mxu1 %v1593_v1  ;;  %v1582_v6 = vld [vmem:[%s2524_s2 + $0x20] sm:$0xff]  ;;  %v1581_v8 = vld [vmem:[%s2524_s2 + $0x18] sm:$0xff]  ;;  %v1580_v10 = vld [vmem:[%s2524_s2 + $0x10] sm:$0xff]  ;;  %529 = vst [vmem:[%s2170_s14 + $0x8] sm:$0xff] %v1981_v17 }
  0x38   : > { %v1590_v7 = vld [vmem:[%s2525_s3 + $0x20] sm:$0xff]  ;;  %v1589_v9 = vld [vmem:[%s2525_s3 + $0x18] sm:$0xff]  ;;  %v1588_v11 = vld [vmem:[%s2525_s3 + $0x10] sm:$0xff] }
  0x39   : > { %v1579_v12 = vld [vmem:[%s2524_s2 + $0x8] sm:$0xff]  ;;  %v1578_v14 = vld [vmem:[%s2524_s2] sm:$0xff] }
  0x3a   : > { %429 = vmatpush.bf16.msra.mxu0 %v1584_v2  ;;  %v1587_v13 = vld [vmem:[%s2525_s3 + $0x8] sm:$0xff]  ;;  %v1586_v15 = vld [vmem:[%s2525_s3] sm:$0xff] }
  0x3b   : > { %511 = vmatpush.bf16.msra.mxu1 %v1592_v3  ;;  %v1577_v16 = vld [vmem:[%s2562_s1] sm:$0xff] }
  0x3e   : > { %430 = vmatpush.bf16.msra.mxu0 %v1583_v4 }
  0x3f   : > { %512 = vmatpush.bf16.msra.mxu1 %v1591_v5 }
  0x42   : > { %431 = vmatpush.bf16.msra.mxu0 %v1582_v6 }
  0x43   : > { %513 = vmatpush.bf16.msra.mxu1 %v1590_v7 }
  0x46   : > { %432 = vmatpush.bf16.msra.mxu0 %v1581_v8 }
  0x47   : > { %514 = vmatpush.bf16.msra.mxu1 %v1589_v9 }
  0x4a   : > { %433 = vmatpush.bf16.msra.mxu0 %v1580_v10 }
  0x4b   : > { %515 = vmatpush.bf16.msra.mxu1 %v1588_v11 }
  0x4e   : > { %434 = vmatpush.bf16.msra.mxu0 %v1579_v12 }
  0x4f   : > { %516 = vmatpush.bf16.msra.mxu1 %v1587_v13 }
  0x52   : > { %435 = vmatpush.bf16.msra.mxu0 %v1578_v14 }
  0x53   : > { %517 = vmatpush.bf16.msra.mxu1 %v1586_v15 }
  0x55   : > { %436 = vmatmul.bf16.vlgmr.msra.gmra.mxu0 %v1577_v16 }
  0x56   : > { %518 = vmatmul.bf16.vlgmr.msra.gmra.mxu1 %v1577_v16 }
  0xd2   : > { %v437_v18 = vpop.f32.mrf.mxu0 }
  0xd3   : > { %v519_v19 = vpop.f32.mrf.mxu1 }
  0xda   : > { %v439_v20 = vpop.f32.mrf.mxu0 }
  0xdb   : > { %v521_v21 = vpop.f32.mrf.mxu1  ;;  %v1609_v22 = vpack.c.bf16 %v439_v20, %v437_v18 }
  0xdc   : > { %v1614_v23 = vpack.c.bf16 %v521_v21, %v519_v19 }
  0xdd   : > { %1610 = vst [vmem:[#allocation2] sm:$0xff] %v1609_v22  }
  0xde   : > { %1615 = vst [vmem:[#allocation3] sm:$0xff] %v1614_v23  }
  0xdf PF: > { %v530_v24 = vld [vmem:[%s2168_s18] sm:$0xff]  ;;  %v1982_v25 = vmov 1   ;;  %v1983_v26 = vmov 0   ;;  %v532_v27 = vld [vmem:[%s2168_s18 + $0x10] sm:$0xff]  ;;  %v531_v28 = vld [vmem:[%s2168_s18 + $0x8] sm:$0xff]  ;;  %v538_v36 = vlaneseq  ;;  %vm654_vm4 = vcmask 130048  }
  0xe0   : > { %1756 = vset.pattern.permute.xlu1 %v1982_v25  ;;  %1755 = vset.pattern.permute.xlu0 %v1983_v26  ;;  %v533_v29 = vld [vmem:[%s2168_s18 + $0x18] sm:$0xff]  ;;  %v534_v30 = vld [vmem:[%s2168_s18 + $0x20] sm:$0xff]  ;;  %v535_v31 = vld [vmem:[%s2168_s18 + $0x28] sm:$0xff]  ;;  %v1984_v43 = vmov 0.0   ;;  %s2568_s16 = sld [smem:[#allocation20_spill]]  ;;  %s1605_s7 = sshll.u32 %s2162_s23, 5 }
  0xe1   : > { %593 = vperm.xlu1 %1756, %v530_v24   ;;  %541 = vperm.xlu0 %1755, %v530_v24   ;;  %v536_v32 = vld [vmem:[%s2168_s18 + $0x30] sm:$0xff]  ;;  %v537_v33 = vld [vmem:[%s2168_s18 + $0x38] sm:$0xff]  ;;  %v2236_v39 = vand.u32 127, %v538_v36  ;;  %v1601_v17 = vld [vmem:[%s2527_s5 + $0x28] sm:$0xff]  ;;  %s2563_s18 = sld [smem:[#allocation19_spill]]  ;;  %s1293_s22 = sshll.u32 %s2172_s13, 4  ;;  %s1294_s22 = int_to_ptr.vmem [resolvable:$true] %s1293_s22 }
  0xe2   : > { %1757 = vset.pattern.permute.xlu2 %v1983_v26  ;;  %v1603_v15 = vld [vmem:[%s2527_s5 + $0x38] sm:$0xff]  ;;  %v1602_v16 = vld [vmem:[%s2527_s5 + $0x30] sm:$0xff]  ;;  %v1600_v18 = vld [vmem:[%s2527_s5 + $0x20] sm:$0xff]  ;;  %s2573_s8 = sld [smem:[#allocation22_spill]]  ;;  %s2574_s25 = sand.u32 1, %s1943_s28  }
  0xe3   : > { %547 = vperm.xlu2 %1757, %v532_v27   ;;  %987 = vmatpush.bf16.msra.mxu2 %v1603_v15  ;;  %v1599_v19 = vld [vmem:[%s2527_s5 + $0x18] sm:$0xff]  ;;  %v1598_v23 = vld [vmem:[%s2527_s5 + $0x10] sm:$0xff]  ;;  %s1262_s20 = scalar_lea.sflag [#allocation7], %s2574_s25 }
  0xe4   : > { %v1594_v35 = vld [vmem:[#allocation2] sm:$0xff]  ;;  %1639 = vmatpush.bf16.msra.mxu3 %v1603_v15 }
  0xe5   : > { %v1595_v34 = vld [vmem:[#allocation3] sm:$0xff]  ;;  %721 = vmatpush.bf16.msra.mxu1 %v1594_v35 }
  0xe6   : > { %674 = vmatpush.bf16.msra.mxu0 %v1595_v34 }
  0xe7   : > { %988 = vmatpush.bf16.msra.mxu2 %v1602_v16  ;;  %v2280_v21 = vld [vmem:[%s2563_s18] ss:$0 sm:$0xff] }
  0xe8   : > { %1640 = vmatpush.bf16.msra.mxu3 %v1602_v16  ;;  %s1292_s30 = scalar_lea.hbm %s2573_s8, %s1605_s7  ;;  %s1849_s23 = scalar_lea.hbm %s2573_s8, 128 }
  0xe9   : > { %596 = vperm.xlu1 %1756, %v531_v28   ;;  %544 = vperm.xlu0 %1755, %v531_v28   ;;  %s1295_s19 = sshll.u32 %s1292_s30, 4  ;;  %s1296_s19 = int_to_ptr.hbm [resolvable:$true] %s1295_s19 }
  0xea   : > { %s1843_s21 = sshra.s32 %s1296_s19, 4  ;;  %s1844_s21 = int_to_ptr.hbm [resolvable:$true] %s1843_s21 }
  0xeb   : > { %550 = vperm.xlu2 %1757, %v533_v29   ;;  %989 = vmatpush.bf16.msra.mxu2 %v1601_v17  ;;  %s1845_s11 = scalar_lea.hbm %s1844_s21, 32  ;;  %p1850_p10 = scmp.lt.s32.totalorder %s1844_s21, %s2573_s8 }
  0xec   : > { %1641 = vmatpush.bf16.msra.mxu3 %v1601_v17  ;;  %p1846_p6 = scmp.ne.s32.totalorder %s1844_s21, %s1845_s11  ;;  %p1851_p12 = scmp.lt.s32.totalorder %s1849_s23, %s1845_s11 }
  0xee   : > { %p1847_p8 = pnand %p1846_p6, %p2137_p11  ;;  %p1852_p13 = por %p1851_p12, %p1850_p10 }
  0xef   : > { %990 = vmatpush.bf16.msra.mxu2 %v1600_v18 }
  0xf0   : > { %1642 = vmatpush.bf16.msra.mxu3 %v1600_v18  ;;  %p1848_p9 = pneg %p1847_p8 }
  0xf1   : > { %602 = vperm.xlu1 %1756, %v533_v29   ;;  %1758 = vset.pattern.permute.xlu0 %v1982_v25 }
  0xf2   : > { %599 = vperm.xlu0 %1758, %v532_v27   ;;  %p1853_p1 = pnand %p1852_p13, %p1848_p9 }
  0xf3   : > { %553 = vperm.xlu2 %1757, %v534_v30   ;;  %991 = vmatpush.bf16.msra.mxu2 %v1599_v19 }
  0xf4   : > { %1643 = vmatpush.bf16.msra.mxu3 %v1599_v19 }
  0xf7   : > { %992 = vmatpush.bf16.msra.mxu2 %v1598_v23 }
  0xf8   : > { %1644 = vmatpush.bf16.msra.mxu3 %v1598_v23 }
  0xf9   : > { %1759 = vset.pattern.permute.xlu1 %v1983_v26 }
  0xfa   : > { %556 = vperm.xlu1 %1759, %v535_v31   ;;  %608 = vperm.xlu0 %1758, %v535_v31  }
  0xfb   : > { %1760 = vset.pattern.permute.xlu2 %v1982_v25 }
  0xfc   : > { %605 = vperm.xlu2 %1760, %v534_v30   ;;  %v1596_v30 = vld [vmem:[%s2527_s5] sm:$0xff] }
 0x102   : > { %559 = vperm.xlu1 %1759, %v536_v32   ;;  %611 = vperm.xlu0 %1758, %v536_v32  }
 0x104   : > { %1761 = vset.pattern.permute.xlu2 %v1983_v26  ;;  %v1597_v26 = vld [vmem:[%s2527_s5 + $0x8] sm:$0xff] }
 0x105   : > { %562 = vperm.xlu2 %1761, %v537_v33   ;;  %993 = vmatpush.bf16.msra.mxu2 %v1597_v26 }
 0x106   : > { %1645 = vmatpush.bf16.msra.mxu3 %v1597_v26 }
 0x109   : > { %994 = vmatpush.bf16.msra.mxu2 %v1596_v30 }
 0x10a   : > { %1762 = vset.pattern.permute.xlu1 %v1982_v25  ;;  %1646 = vmatpush.bf16.msra.mxu3 %v1596_v30 }
 0x10b   : > { %614 = vperm.xlu1 %1762, %v537_v33  }
 0x13d   : > { %v548_v40 = vpop.permute.xlu2 %547 }
 0x13e   : > { %vm566_vm5 = vcmp.eq.s32.totalorder %v548_v40, %v2236_v39 }
 0x13f   : > { %v1489_v53 = vsel %vm566_vm5, 1.0, %v1984_v43 }
 0x145   : > { %v551_v50 = vpop.permute.xlu2 %550 }
 0x146   : > { %vm567_vm6 = vcmp.eq.s32.totalorder %v551_v50, %v2236_v39 }
 0x147   : > { %v1490_v54 = vsel %vm567_vm6, 1.0, %v1984_v43 }
 0x148   : > { %v589_v58 = vpack.c.bf16 %v1490_v54, %v1489_v53 }
 0x14d   : > { %v554_v57 = vpop.permute.xlu2 %553 }
 0x14e   : > { %vm568_vm12 = vcmp.eq.s32.totalorder %v554_v57, %v2236_v39 }
 0x14f   : > { %v1491_v3 = vsel %vm568_vm12, 1.0, %v1984_v43 }
 0x153   : > { %v594_v37 = vpop.permute.xlu1 %593  ;;  %v542_v38 = vpop.permute.xlu0 %541 }
 0x154   : > { %vm616_vm0 = vcmp.eq.s32.totalorder %v594_v37, %v2236_v39  ;;  %vm564_vm1 = vcmp.eq.s32.totalorder %v542_v38, %v2236_v39 }
 0x155   : > { %v1495_v44 = vsel %vm616_vm0, 1.0, %v1984_v43  ;;  %v1487_v45 = vsel %vm564_vm1, 1.0, %v1984_v43 }
 0x156   : > { %v606_v61 = vpop.permute.xlu2 %605 }
 0x157   : > { %vm620_vm9 = vcmp.eq.s32.totalorder %v606_v61, %v2236_v39 }
 0x158   : > { %v1499_v63 = vsel %vm620_vm9, 1.0, %v1984_v43 }
 0x15b   : > { %v597_v41 = vpop.permute.xlu1 %596  ;;  %v545_v42 = vpop.permute.xlu0 %544 }
 0x15c   : > { %vm617_vm2 = vcmp.eq.s32.totalorder %v597_v41, %v2236_v39  ;;  %vm565_vm3 = vcmp.eq.s32.totalorder %v545_v42, %v2236_v39 }
 0x15d   : > { %v1496_v46 = vsel %vm617_vm2, 1.0, %v1984_v43  ;;  %v1488_v47 = vsel %vm565_vm3, 1.0, %v1984_v43 }
 0x15e   : > { %v640_v48 = vpack.c.bf16 %v1496_v46, %v1495_v44  ;;  %v588_v49 = vpack.c.bf16 %v1488_v47, %v1487_v45 }
 0x15f   : > { %v563_v6 = vpop.permute.xlu2 %562 }
 0x160   : > { %1507 = vmatmul.msk.bf16.vlgmr.msra.gmra.mxu0 %vm654_vm4, %v640_v48  ;;  %1186 = vxpose.xlu2.c.b16.start [1/4] (short) (narrow) %v588_v49, 16  ;;  %vm571_vm14 = vcmp.eq.s32.totalorder %v563_v6, %v2236_v39 }
 0x161   : > { %1515 = vmatmul.msk.bf16.vlgmr.msra.gmra.mxu1 %vm654_vm4, %v588_v49  ;;  %v1494_v10 = vsel %vm571_vm14, 1.0, %v1984_v43 }
 0x163   : > { %v603_v51 = vpop.permute.xlu1 %602 }
 0x164   : > { %v600_v52 = vpop.permute.xlu0 %599  ;;  %vm619_vm7 = vcmp.eq.s32.totalorder %v603_v51, %v2236_v39 }
 0x165   : > { %vm618_vm8 = vcmp.eq.s32.totalorder %v600_v52, %v2236_v39  ;;  %v1498_v55 = vsel %vm619_vm7, 1.0, %v1984_v43 }
 0x166   : > { %v1497_v56 = vsel %vm618_vm8, 1.0, %v1984_v43 }
 0x167   : > { %v641_v59 = vpack.c.bf16 %v1498_v55, %v1497_v56 }
 0x16c   : > { %v557_v60 = vpop.permute.xlu1 %556  ;;  %v609_v62 = vpop.permute.xlu0 %608 }
 0x16d   : > { %vm569_vm10 = vcmp.eq.s32.totalorder %v557_v60, %v2236_v39  ;;  %vm621_vm11 = vcmp.eq.s32.totalorder %v609_v62, %v2236_v39 }
 0x16e   : > { %v1492_v0 = vsel %vm569_vm10, 1.0, %v1984_v43  ;;  %v1500_v1 = vsel %vm621_vm11, 1.0, %v1984_v43 }
 0x16f   : > { %v590_v4 = vpack.c.bf16 %v1492_v0, %v1491_v3  ;;  %v642_v5 = vpack.c.bf16 %v1500_v1, %v1499_v63 }
 0x170   : > { %1187 = vxpose.xlu2.c.b16.cont [2/4] (short) (narrow) %v589_v58, 16  ;;  %1508 = vmatmul.msk.bf16.gmra.mxu0 %vm654_vm4, %v641_v59 }
 0x171   : > { %1516 = vmatmul.msk.bf16.gmra.mxu1 %vm654_vm4, %v589_v58 }
 0x174   : > { %v560_v2 = vpop.permute.xlu1 %559  ;;  %v612_v8 = vpop.permute.xlu0 %611 }
 0x175   : > { %vm570_vm13 = vcmp.eq.s32.totalorder %v560_v2, %v2236_v39  ;;  %vm622_vm0 = vcmp.eq.s32.totalorder %v612_v8, %v2236_v39 }
 0x176   : > { %v1493_v9 = vsel %vm570_vm13, 1.0, %v1984_v43  ;;  %v1501_v12 = vsel %vm622_vm0, 1.0, %v1984_v43 }
 0x177   : > { %v591_v13 = vpack.c.bf16 %v1494_v10, %v1493_v9 }
 0x17d   : > { %v615_v7 = vpop.permute.xlu1 %614 }
 0x17e   : > { %vm623_vm15 = vcmp.eq.s32.totalorder %v615_v7, %v2236_v39 }
 0x17f   : > { %v1502_v11 = vsel %vm623_vm15, 1.0, %v1984_v43 }
 0x180   : > { %1188 = vxpose.xlu2.c.b16.cont [3/4] (short) (narrow) %v590_v4, 16  ;;  %1509 = vmatmul.msk.bf16.gmra.mxu0 %vm654_vm4, %v642_v5  ;;  %v643_v14 = vpack.c.bf16 %v1502_v11, %v1501_v12 }
 0x181   : > { %1517 = vmatmul.msk.bf16.gmra.mxu1 %vm654_vm4, %v590_v4 }
 0x190   : > { %1189 = vxpose.xlu2.c.b16.end [4/4] (short) (narrow) %v591_v13, 16  ;;  %1510 = vmatmul.msk.bf16.gmra.mxu0 %vm654_vm4, %v643_v14 }
 0x191   : > { %1518 = vmatmul.msk.bf16.gmra.mxu1 %vm654_vm4, %v591_v13 }
 0x1dd   : > { %v676_v20 = vpop.f32.mrf.mxu0 }
 0x1de   : > { %v723_v22 = vpop.f32.mrf.mxu1 }
 0x1df   : > { %v724_v24 = vadd.f32 %v723_v22, %v676_v20 }
 0x1e1   : > { %v2286_v25 = vadd.f32 %v2280_v21, %v724_v24 }
 0x1e3   : > { %v1519_v27 = vmul.f32 -1.442695, %v2286_v25 }
 0x1e5   : > { %1765 = vpow2.f32 %v1519_v27  ;;  %v678_v28 = vpop.f32.mrf.mxu0 }
 0x1e6   : > { %v725_v29 = vpop.f32.mrf.mxu1 }
 0x1e7   : > { %v726_v31 = vadd.f32 %v725_v29, %v678_v28 }
 0x1e9   : > { %v2296_v32 = vadd.f32 %v2280_v21, %v726_v31 }
 0x1eb   : > { %v1766_v33 = vpop.eup %1765  ;;  %v1520_v34 = vmul.f32 -1.442695, %v2296_v32 }
 0x1ec   : > { %v779_v35 = vadd.f32 1.0, %v1766_v33 }
 0x1ed   : > { %1767 = vpow2.f32 %v1520_v34  ;;  %v681_v36 = vpop.f32.mrf.mxu0 }
 0x1ee   : > { %1769 = vrcp.f32 %v779_v35  ;;  %v728_v37 = vpop.f32.mrf.mxu1  ;;  %v798_v59 = vand.u32 2147483648, %v779_v35  ;;  %vm792_vm2 = vweird.f32 %v779_v35  ;;  %v796_v61 = vand.u32 2147483647, %v779_v35 }
 0x1ef   : > { %v729_v38 = vadd.f32 %v728_v37, %v681_v36 }
 0x1f0   : > { %v799_v5 = vor.u32 1.1754944e-38, %v798_v59  ;;  %vm797_vm5 = vcmp.eq.f32.partialorder %v796_v61, 8.507059e+37 }
 0x1f1   : > { %v2300_v39 = vadd.f32 %v2280_v21, %v729_v38 }
 0x1f3   : > { %v1768_v40 = vpop.eup %1767  ;;  %v1521_v41 = vmul.f32 -1.442695, %v2300_v39 }
 0x1f4   : > { %v1770_v42 = vpop.eup %1769  ;;  %v780_v43 = vadd.f32 1.0, %v1768_v40 }
 0x1f5   : > { %1771 = vpow2.f32 %v1521_v41  ;;  %v683_v44 = vpop.f32.mrf.mxu0  ;;  %v788_v45 = vmul.f32 %v1770_v42, %v779_v35  ;;  %vm793_vm1 = vweird.f32 %v1770_v42 }
 0x1f6   : > { %1773 = vrcp.f32 %v780_v43  ;;  %v730_v46 = vpop.f32.mrf.mxu1  ;;  %vm2310_vm3 = vmor %vm792_vm2, %vm793_vm1  ;;  %v811_v0 = vand.u32 2147483647, %v780_v43  ;;  %v813_v1 = vand.u32 2147483648, %v780_v43  ;;  %vm807_vm6 = vweird.f32 %v780_v43 }
 0x1f7   : > { %v731_v47 = vadd.f32 %v730_v46, %v683_v44  ;;  %v789_v48 = vsub.f32 1.0, %v788_v45 }
 0x1f8   : > { %v814_v12 = vor.u32 1.1754944e-38, %v813_v1  ;;  %vm812_vm8 = vcmp.eq.f32.partialorder %v811_v0, 8.507059e+37 }
 0x1f9   : > { %v2304_v49 = vadd.f32 %v2280_v21, %v731_v47  ;;  %v790_v50 = vmul.f32 %v1770_v42, %v789_v48 }
 0x1fb   : > { %v1772_v51 = vpop.eup %1771  ;;  %v1522_v52 = vmul.f32 -1.442695, %v2304_v49  ;;  %v791_v56 = vadd.f32 %v1770_v42, %v790_v50 }
 0x1fc   : > { %v1774_v53 = vpop.eup %1773  ;;  %v2307_v54 = vadd.f32 1.0, %v1772_v51 }
 0x1fd   : > { %1775 = vpow2.f32 %v1522_v52  ;;  %v686_v55 = vpop.f32.mrf.mxu0  ;;  %v803_v57 = vmul.f32 %v1774_v53, %v780_v43  ;;  %v795_v3 = vsel %vm2310_vm3, %v1770_v42, %v791_v56  ;;  %vm808_vm4 = vweird.f32 %v1774_v53 }
 0x1fe   : > { %1777 = vrcp.f32 %v2307_v54  ;;  %v733_v58 = vpop.f32.mrf.mxu1  ;;  %v800_v11 = vsel %vm797_vm5, %v799_v5, %v795_v3  ;;  %vm809_vm7 = vmor %vm807_vm6, %vm808_vm4  ;;  %v828_v34 = vand.u32 2147483648, %v2307_v54  ;;  %vm822_vm10 = vweird.f32 %v2307_v54 }
 0x1ff   : > { %v734_v60 = vadd.f32 %v733_v58, %v686_v55  ;;  %v804_v62 = vsub.f32 1.0, %v803_v57  ;;  %v907_v19 = vmul.f32 %v800_v11, %v2286_v25  ;;  %v826_v36 = vand.u32 2147483647, %v2307_v54 }
 0x200   : > { %v829_v45 = vor.u32 1.1754944e-38, %v828_v34 }
 0x201   : > { %v2315_v2 = vadd.f32 %v2280_v21, %v734_v60  ;;  %v805_v4 = vmul.f32 %v1774_v53, %v804_v62  ;;  %vm827_vm13 = vcmp.eq.f32.partialorder %v826_v36, 8.507059e+37 }
 0x203   : > { %v1776_v6 = vpop.eup %1775  ;;  %v1523_v7 = vmul.f32 -1.442695, %v2315_v2  ;;  %v806_v8 = vadd.f32 %v1774_v53, %v805_v4 }
 0x204   : > { %v1778_v9 = vpop.eup %1777  ;;  %v782_v10 = vadd.f32 1.0, %v1776_v6 }
 0x205   : > { %1779 = vpow2.f32 %v1523_v7  ;;  %v688_v13 = vpop.f32.mrf.mxu0  ;;  %v810_v14 = vsel %vm809_vm7, %v1774_v53, %v806_v8  ;;  %v818_v15 = vmul.f32 %v1778_v9, %v2307_v54  ;;  %vm823_vm9 = vweird.f32 %v1778_v9 }
 0x206   : > { %1781 = vrcp.f32 %v782_v10  ;;  %v735_v16 = vpop.f32.mrf.mxu1  ;;  %v815_v17 = vsel %vm812_vm8, %v814_v12, %v810_v14  ;;  %vm2333_vm11 = vmor %vm822_vm10, %vm823_vm9  ;;  %v841_v40 = vand.u32 2147483647, %v782_v10  ;;  %v843_v41 = vand.u32 2147483648, %v782_v10 }
 0x207   : > { %v736_v18 = vadd.f32 %v735_v16, %v688_v13  ;;  %v908_v20 = vmul.f32 %v815_v17, %v2296_v32  ;;  %v819_v22 = vsub.f32 1.0, %v818_v15  ;;  %vm837_vm14 = vweird.f32 %v782_v10 }
 0x208   : > { %v844_v53 = vor.u32 1.1754944e-38, %v843_v41  ;;  %vm842_vm0 = vcmp.eq.f32.partialorder %v841_v40, 8.507059e+37 }
 0x209   : > { %v2324_v23 = vadd.f32 %v2280_v21, %v736_v18  ;;  %v915_v24 = vpack.c.bf16 %v908_v20, %v907_v19  ;;  %v820_v26 = vmul.f32 %v1778_v9, %v819_v22 }
 0x20b   : > { %v1780_v27 = vpop.eup %1779  ;;  %v1524_v28 = vmul.f32 -1.442695, %v2324_v23  ;;  %995 = vmatmul.bf16.vlgmr.msra.gmra.mxu2 %v915_v24  ;;  %v821_v33 = vadd.f32 %v1778_v9, %v820_v26 }
 0x20c   : > { %v1782_v29 = vpop.eup %1781  ;;  %v2327_v30 = vadd.f32 1.0, %v1780_v27 }
 0x20d   : > { %1783 = vpow2.f32 %v1524_v28  ;;  %v691_v31 = vpop.f32.mrf.mxu0  ;;  %v833_v25 = vmul.f32 %v1782_v29, %v782_v10  ;;  %v825_v43 = vsel %vm2333_vm11, %v1778_v9, %v821_v33  ;;  %vm838_vm12 = vweird.f32 %v1782_v29 }
 0x20e   : > { %1785 = vrcp.f32 %v2327_v30  ;;  %v738_v32 = vpop.f32.mrf.mxu1  ;;  %v830_v52 = vsel %vm827_vm13, %v829_v45, %v825_v43  ;;  %vm839_vm15 = vmor %vm837_vm14, %vm838_vm12  ;;  %vm852_vm2 = vweird.f32 %v2327_v30 }
 0x20f   : > { %v739_v35 = vadd.f32 %v738_v32, %v691_v31  ;;  %v834_v37 = vsub.f32 1.0, %v833_v25  ;;  %v909_v60 = vmul.f32 %v830_v52, %v2300_v39  ;;  %v858_v39 = vand.u32 2147483648, %v2327_v30 }
 0x211   : > { %v2338_v42 = vadd.f32 %v2280_v21, %v739_v35  ;;  %v835_v44 = vmul.f32 %v1782_v29, %v834_v37  ;;  %v859_v13 = vor.u32 1.1754944e-38, %v858_v39 }
 0x213   : > { %v1784_v46 = vpop.eup %1783  ;;  %v1525_v47 = vmul.f32 -1.442695, %v2338_v42  ;;  %v836_v48 = vadd.f32 %v1782_v29, %v835_v44 }
 0x214   : > { %v1786_v50 = vpop.eup %1785  ;;  %v784_v51 = vadd.f32 1.0, %v1784_v46 }
 0x215   : > { %1787 = vpow2.f32 %v1525_v47  ;;  %v693_v54 = vpop.f32.mrf.mxu0  ;;  %v840_v55 = vsel %vm839_vm15, %v1782_v29, %v836_v48  ;;  %v848_v56 = vmul.f32 %v1786_v50, %v2327_v30  ;;  %vm853_vm1 = vweird.f32 %v1786_v50 }
 0x216   : > { %1789 = vrcp.f32 %v784_v51  ;;  %v740_v57 = vpop.f32.mrf.mxu1  ;;  %v845_v58 = vsel %vm842_vm0, %v844_v53, %v840_v55  ;;  %vm854_vm3 = vmor %vm852_vm2, %vm853_vm1  ;;  %v873_v9 = vand.u32 2147483648, %v784_v51  ;;  %v871_v12 = vand.u32 2147483647, %v784_v51 }
 0x217   : > { %v741_v59 = vadd.f32 %v740_v57, %v693_v54  ;;  %v910_v61 = vmul.f32 %v845_v58, %v2304_v49  ;;  %v849_v62 = vsub.f32 1.0, %v848_v56  ;;  %vm867_vm6 = vweird.f32 %v784_v51 }
 0x218   : > { %v874_v19 = vor.u32 1.1754944e-38, %v873_v9  ;;  %vm872_vm8 = vcmp.eq.f32.partialorder %v871_v12, 8.507059e+37 }
 0x219   : > { %v2347_v63 = vadd.f32 %v2280_v21, %v741_v59  ;;  %v916_v0 = vpack.c.bf16 %v910_v61, %v909_v60  ;;  %v850_v1 = vmul.f32 %v1786_v50, %v849_v62  ;;  %v856_v21 = vand.u32 2147483647, %v2327_v30 }
 0x21b   : > { %v1788_v3 = vpop.eup %1787  ;;  %v1526_v4 = vmul.f32 -1.442695, %v2347_v63  ;;  %1000 = vmatmul.bf16.gmra.mxu2 %v916_v0  ;;  %v851_v7 = vadd.f32 %v1786_v50, %v850_v1  ;;  %vm857_vm5 = vcmp.eq.f32.partialorder %v856_v21, 8.507059e+37 }
 0x21c   : > { %v1790_v5 = vpop.eup %1789  ;;  %v785_v6 = vadd.f32 1.0, %v1788_v3 }
 0x21d   : > { %1791 = vpow2.f32 %v1526_v4  ;;  %v863_v8 = vmul.f32 %v1790_v5, %v784_v51  ;;  %v855_v10 = vsel %vm854_vm3, %v1786_v50, %v851_v7  ;;  %vm868_vm4 = vweird.f32 %v1790_v5  ;;  %v2360_v50 = vld [vmem:[%s2568_s16] ss:$0 sm:$0xff] }
 0x21e   : > { %1793 = vrcp.f32 %v785_v6  ;;  %v860_v18 = vsel %vm857_vm5, %v859_v13, %v855_v10  ;;  %vm869_vm7 = vmor %vm867_vm6, %vm868_vm4  ;;  %v888_v32 = vand.u32 2147483648, %v785_v6  ;;  %vm882_vm10 = vweird.f32 %v785_v6 }
 0x21f   : > { %v864_v49 = vsub.f32 1.0, %v863_v8  ;;  %v911_v26 = vmul.f32 %v860_v18, %v2315_v2  ;;  %v886_v34 = vand.u32 2147483647, %v785_v6 }
 0x220   : > { %v889_v40 = vor.u32 1.1754944e-38, %v888_v32 }
 0x221   : > { %v865_v11 = vmul.f32 %v1790_v5, %v864_v49  ;;  %vm887_vm13 = vcmp.eq.f32.partialorder %v886_v34, 8.507059e+37 }
 0x223   : > { %v1792_v14 = vpop.eup %1791  ;;  %v866_v15 = vadd.f32 %v1790_v5, %v865_v11 }
 0x224   : > { %v1794_v16 = vpop.eup %1793  ;;  %v786_v17 = vadd.f32 1.0, %v1792_v14 }
 0x225   : > { %v870_v20 = vsel %vm869_vm7, %v1790_v5, %v866_v15  ;;  %v878_v22 = vmul.f32 %v1794_v16, %v785_v6  ;;  %vm883_vm9 = vweird.f32 %v1794_v16 }
 0x226   : > { %1795 = vrcp.f32 %v786_v17  ;;  %v875_v24 = vsel %vm872_vm8, %v874_v19, %v870_v20  ;;  %vm884_vm11 = vmor %vm882_vm10, %vm883_vm9  ;;  %v903_v36 = vand.u32 2147483648, %v786_v17  ;;  %v901_v2 = vand.u32 2147483647, %v786_v17 }
 0x227   : > { %v912_v27 = vmul.f32 %v875_v24, %v2324_v23  ;;  %v879_v28 = vsub.f32 1.0, %v878_v22  ;;  %vm897_vm14 = vweird.f32 %v786_v17 }
 0x228   : > { %v904_v43 = vor.u32 1.1754944e-38, %v903_v36  ;;  %vm902_vm0 = vcmp.eq.f32.partialorder %v901_v2, 8.507059e+37 }
 0x229   : > { %v917_v29 = vpack.c.bf16 %v912_v27, %v911_v26  ;;  %v880_v30 = vmul.f32 %v1794_v16, %v879_v28 }
 0x22b   : > { %1005 = vmatmul.bf16.gmra.mxu2 %v917_v29  ;;  %v881_v33 = vadd.f32 %v1794_v16, %v880_v30 }
 0x22c   : > { %v1796_v31 = vpop.eup %1795 }
 0x22d   : > { %v893_v25 = vmul.f32 %v1796_v31, %v786_v17  ;;  %v885_v37 = vsel %vm884_vm11, %v1794_v16, %v881_v33  ;;  %vm898_vm12 = vweird.f32 %v1796_v31 }
 0x22e   : > { %v890_v41 = vsel %vm887_vm13, %v889_v40, %v885_v37  ;;  %vm899_vm15 = vmor %vm897_vm14, %vm898_vm12 }
 0x22f   : > { %v894_v35 = vsub.f32 1.0, %v893_v25  ;;  %v913_v46 = vmul.f32 %v890_v41, %v2338_v42 }
 0x231   : > { %v895_v38 = vmul.f32 %v1796_v31, %v894_v35 }
 0x233   : > { %v896_v23 = vadd.f32 %v1796_v31, %v895_v38 }
 0x235   : > { %v900_v44 = vsel %vm899_vm15, %v1796_v31, %v896_v23 }
 0x236   : > { %v905_v45 = vsel %vm902_vm0, %v904_v43, %v900_v44 }
 0x237   : > { %v914_v47 = vmul.f32 %v905_v45, %v2347_v63 }
 0x239   : > { %v918_v48 = vpack.c.bf16 %v914_v47, %v913_v46 }
 0x23b   : > { %1010 = vmatmul.bf16.vlgmr.msra.gmra.mxu3 %v918_v48 }
 0x28e   : > { %v996_v51 = vpop.f32.mrf.mxu2 }
 0x28f   : > { %v997_v52 = vadd.f32 %v2360_v50, %v996_v51 }
 0x291   : > { %v1559_v53 = vmul.f32 -1.442695, %v997_v52 }
 0x293   : > { %1797 = vpow2.f32 %v1559_v53 }
 0x296   : > { %v998_v54 = vpop.f32.mrf.mxu2 }
 0x297   : > { %v999_v55 = vadd.f32 %v2360_v50, %v998_v54 }
 0x299   : > { %v1798_v56 = vpop.eup %1797  ;;  %v1560_v57 = vmul.f32 -1.442695, %v999_v55 }
 0x29a   : > { %v1040_v42 = vadd.f32 1.0, %v1798_v56 }
 0x29b   : > { %1799 = vpow2.f32 %v1560_v57 }
 0x29c   : > { %1801 = vrcp.f32 %v1040_v42  ;;  %v1059_v9 = vand.u32 2147483648, %v1040_v42  ;;  %vm1053_vm2 = vweird.f32 %v1040_v42  ;;  %v1057_v10 = vand.u32 2147483647, %v1040_v42 }
 0x29e   : > { %v1001_v58 = vpop.f32.mrf.mxu2  ;;  %v1060_v19 = vor.u32 1.1754944e-38, %v1059_v9  ;;  %vm1058_vm5 = vcmp.eq.f32.partialorder %v1057_v10, 8.507059e+37 }
 0x29f   : > { %v2365_v59 = vadd.f32 %v2360_v50, %v1001_v58 }
 0x2a1   : > { %v1800_v60 = vpop.eup %1799  ;;  %v1561_v61 = vmul.f32 -1.442695, %v2365_v59 }
 0x2a2   : > { %v1802_v62 = vpop.eup %1801  ;;  %v1041_v63 = vadd.f32 1.0, %v1800_v60 }
 0x2a3   : > { %v1049_v0 = vmul.f32 %v1802_v62, %v1040_v42  ;;  %1803 = vpow2.f32 %v1561_v61  ;;  %vm1054_vm1 = vweird.f32 %v1802_v62 }
 0x2a4   : > { %1805 = vrcp.f32 %v1041_v63  ;;  %vm2375_vm3 = vmor %vm1053_vm2, %vm1054_vm1  ;;  %v1072_v13 = vand.u32 2147483647, %v1041_v63  ;;  %v1074_v14 = vand.u32 2147483648, %v1041_v63  ;;  %vm1068_vm6 = vweird.f32 %v1041_v63 }
 0x2a5   : > { %v1050_v1 = vsub.f32 1.0, %v1049_v0 }
 0x2a6   : > { %v1003_v3 = vpop.f32.mrf.mxu2  ;;  %v1075_v28 = vor.u32 1.1754944e-38, %v1074_v14  ;;  %vm1073_vm8 = vcmp.eq.f32.partialorder %v1072_v13, 8.507059e+37 }
 0x2a7   : > { %v1051_v4 = vmul.f32 %v1802_v62, %v1050_v1  ;;  %v2369_v5 = vadd.f32 %v2360_v50, %v1003_v3 }
 0x2a9   : > { %v1804_v6 = vpop.eup %1803  ;;  %v1562_v7 = vmul.f32 -1.442695, %v2369_v5  ;;  %v1052_v21 = vadd.f32 %v1802_v62, %v1051_v4 }
 0x2aa   : > { %v1806_v8 = vpop.eup %1805  ;;  %v2372_v39 = vadd.f32 1.0, %v1804_v6 }
 0x2ab   : > { %v1064_v49 = vmul.f32 %v1806_v8, %v1041_v63  ;;  %1807 = vpow2.f32 %v1562_v7  ;;  %v1056_v16 = vsel %vm2375_vm3, %v1802_v62, %v1052_v21  ;;  %vm1069_vm4 = vweird.f32 %v1806_v8 }
 0x2ac   : > { %1809 = vrcp.f32 %v2372_v39  ;;  %v1061_v27 = vsel %vm1058_vm5, %v1060_v19, %v1056_v16  ;;  %vm1070_vm7 = vmor %vm1068_vm6, %vm1069_vm4  ;;  %v1089_v45 = vand.u32 2147483648, %v2372_v39  ;;  %vm1083_vm10 = vweird.f32 %v2372_v39 }
 0x2ad   : > { %v1065_v11 = vsub.f32 1.0, %v1064_v49  ;;  %v2386_v25 = vmul.f32 %v1061_v27, %v997_v52  ;;  %v1087_v46 = vand.u32 2147483647, %v2372_v39 }
 0x2ae   : > { %v1006_v15 = vpop.f32.mrf.mxu2  ;;  %v1090_v57 = vor.u32 1.1754944e-38, %v1089_v45 }
 0x2af   : > { %v1066_v17 = vmul.f32 %v1806_v8, %v1065_v11  ;;  %v2382_v18 = vadd.f32 %v2360_v50, %v1006_v15  ;;  %vm1088_vm13 = vcmp.eq.f32.partialorder %v1087_v46, 8.507059e+37 }
 0x2b1   : > { %v1808_v20 = vpop.eup %1807  ;;  %v1067_v22 = vadd.f32 %v1806_v8, %v1066_v17  ;;  %v1563_v24 = vmul.f32 -1.442695, %v2382_v18 }
 0x2b2   : > { %v1810_v26 = vpop.eup %1809  ;;  %v1043_v29 = vadd.f32 1.0, %v1808_v20 }
 0x2b3   : > { %v1071_v30 = vsel %vm1070_vm7, %v1806_v8, %v1067_v22  ;;  %v1079_v31 = vmul.f32 %v1810_v26, %v2372_v39  ;;  %1811 = vpow2.f32 %v1563_v24  ;;  %vm1084_vm9 = vweird.f32 %v1810_v26 }
 0x2b4   : > { %v1076_v33 = vsel %vm1073_vm8, %v1075_v28, %v1071_v30  ;;  %1813 = vrcp.f32 %v1043_v29  ;;  %vm2403_vm11 = vmor %vm1083_vm10, %vm1084_vm9  ;;  %v1102_v51 = vand.u32 2147483647, %v1043_v29  ;;  %v1104_v52 = vand.u32 2147483648, %v1043_v29 }
 0x2b5   : > { %v2388_v32 = vmul.f32 %v1076_v33, %v999_v55  ;;  %v1080_v34 = vsub.f32 1.0, %v1079_v31  ;;  %vm1098_vm14 = vweird.f32 %v1043_v29 }
 0x2b6   : > { %v1008_v35 = vpop.f32.mrf.mxu2  ;;  %v1105_v63 = vor.u32 1.1754944e-38, %v1104_v52  ;;  %vm1103_vm0 = vcmp.eq.f32.partialorder %v1102_v51, 8.507059e+37 }
 0x2b7   : > { %v1619_v36 = vpack.c.bf16 %v2388_v32, %v2386_v25  ;;  %v1081_v37 = vmul.f32 %v1810_v26, %v1080_v34  ;;  %v2393_v38 = vadd.f32 %v2360_v50, %v1008_v35 }
 0x2b9   : > { %v1812_v2 = vpop.eup %1811  ;;  %1620 = vst [vmem:[%s2172_s13] sm:$0xff] %v1619_v36   ;;  %v1564_v40 = vmul.f32 -1.442695, %v2393_v38  ;;  %v1082_v43 = vadd.f32 %v1810_v26, %v1081_v37 }
 0x2ba   : > { %v1814_v23 = vpop.eup %1813  ;;  %v2397_v41 = vadd.f32 1.0, %v1812_v2 }
 0x2bb   : > { %v1094_v44 = vmul.f32 %v1814_v23, %v1043_v29  ;;  %1815 = vpow2.f32 %v1564_v40  ;;  %v1086_v54 = vsel %vm2403_vm11, %v1810_v26, %v1082_v43  ;;  %vm1099_vm12 = vweird.f32 %v1814_v23 }
 0x2bc   : > { %1817 = vrcp.f32 %v2397_v41  ;;  %v1091_v62 = vsel %vm1088_vm13, %v1090_v57, %v1086_v54  ;;  %vm1100_vm15 = vmor %vm1098_vm14, %vm1099_vm12  ;;  %vm1113_vm2 = vweird.f32 %v2397_v41  ;;  %v1117_v15 = vand.u32 2147483647, %v2397_v41 }
 0x2bd   : > { %v1095_v47 = vsub.f32 1.0, %v1094_v44  ;;  %v2415_v6 = vmul.f32 %v1091_v62, %v2365_v59 }
 0x2be   : > { %v1011_v53 = vpop.f32.mrf.mxu3  ;;  %vm1118_vm5 = vcmp.eq.f32.partialorder %v1117_v15, 8.507059e+37 }
 0x2bf   : > { %v1096_v55 = vmul.f32 %v1814_v23, %v1095_v47  ;;  %v2410_v56 = vadd.f32 %v2360_v50, %v1011_v53 }
 0x2c1   : > { %v1816_v42 = vpop.eup %1815  ;;  %v1097_v58 = vadd.f32 %v1814_v23, %v1096_v55  ;;  %v1565_v60 = vmul.f32 -1.442695, %v2410_v56 }
 0x2c2   : > { %v1818_v61 = vpop.eup %1817  ;;  %v1045_v0 = vadd.f32 1.0, %v1816_v42 }
 0x2c3   : > { %v1101_v1 = vsel %vm1100_vm15, %v1814_v23, %v1097_v58  ;;  %v1109_v3 = vmul.f32 %v1818_v61, %v2397_v41  ;;  %1819 = vpow2.f32 %v1565_v60  ;;  %vm1114_vm1 = vweird.f32 %v1818_v61 }
 0x2c4   : > { %v1106_v4 = vsel %vm1103_vm0, %v1105_v63, %v1101_v1  ;;  %1821 = vrcp.f32 %v1045_v0  ;;  %vm1115_vm3 = vmor %vm1113_vm2, %vm1114_vm1  ;;  %v1132_v20 = vand.u32 2147483647, %v1045_v0  ;;  %vm1128_vm6 = vweird.f32 %v1045_v0 }
 0x2c5   : > { %v2418_v7 = vmul.f32 %v1106_v4, %v2369_v5  ;;  %v1110_v8 = vsub.f32 1.0, %v1109_v3  ;;  %v1119_v5 = vand.u32 2147483648, %v2397_v41  ;;  %vm1226_vm1 = vcmask 523264  }
 0x2c6   : > { %v1013_v39 = vpop.f32.mrf.mxu3  ;;  %vm1133_vm8 = vcmp.eq.f32.partialorder %v1132_v20, 8.507059e+37 }
 0x2c7   : > { %v1624_v21 = vpack.c.bf16 %v2418_v7, %v2415_v6  ;;  %v1111_v49 = vmul.f32 %v1818_v61, %v1110_v8  ;;  %v2423_v9 = vadd.f32 %v2360_v50, %v1013_v39  ;;  %v1134_v50 = vand.u32 2147483648, %v1045_v0 }
 0x2c8   : > { %v1120_v22 = vor.u32 1.1754944e-38, %v1119_v5 }
 0x2c9   : > { %v1820_v10 = vpop.eup %1819  ;;  %1636 = vst [vmem:[%s2172_s13 + $0x8] sm:$0xff] %v1624_v21   ;;  %v1566_v11 = vmul.f32 -1.442695, %v2423_v9  ;;  %v1112_v59 = vadd.f32 %v1818_v61, %v1111_v49  ;;  %v1135_v29 = vor.u32 1.1754944e-38, %v1134_v50  ;;  %v1180_v21 = vpack.c.bf16 %v2415_v6, %v2415_v6  ;;  %v1194_v6 = vpop.trf.xlu2 }
 0x2ca   : > { %v1822_v12 = vpop.eup %1821  ;;  %v1046_v13 = vadd.f32 1.0, %v1820_v10  ;;  %v1179_v10 = vpack.c.bf16 %v2388_v32, %v2388_v32 }
 0x2cb   : > { %v1124_v14 = vmul.f32 %v1822_v12, %v1045_v0  ;;  %1823 = vpow2.f32 %v1566_v11  ;;  %v1116_v17 = vsel %vm1115_vm3, %v1818_v61, %v1112_v59  ;;  %vm1129_vm4 = vweird.f32 %v1822_v12 }
 0x2cc   : > { %1825 = vrcp.f32 %v1046_v13  ;;  %v1121_v28 = vsel %vm1118_vm5, %v1120_v22, %v1116_v17  ;;  %vm1130_vm7 = vmor %vm1128_vm6, %vm1129_vm4  ;;  %v1149_v23 = vand.u32 2147483648, %v1046_v13  ;;  %vm1143_vm10 = vweird.f32 %v1046_v13 }
 0x2cd   : > { %v1125_v16 = vsub.f32 1.0, %v1124_v14  ;;  %v1172_v35 = vmul.f32 %v1121_v28, %v2382_v18  ;;  %v1147_v43 = vand.u32 2147483647, %v1046_v13  ;;  %v1212_v11 = vunpack.c.l.b16 %v1180_v21 }
 0x2ce   : > { %v1150_v47 = vor.u32 1.1754944e-38, %v1149_v23 }
 0x2cf   : > { %v1126_v19 = vmul.f32 %v1822_v12, %v1125_v16  ;;  %vm1148_vm12 = vcmp.eq.f32.partialorder %v1147_v43, 8.507059e+37  ;;  %v1182_v3 = vpack.c.bf16 %v1172_v35, %v1172_v35 }
 0x2d1   : > { %v1824_v24 = vpop.eup %1823  ;;  %v1127_v26 = vadd.f32 %v1822_v12, %v1126_v19  ;;  %v1214_v39 = vunpack.c.l.b16 %v1182_v3 }
 0x2d2   : > { %v1826_v27 = vpop.eup %1825  ;;  %v1047_v30 = vadd.f32 1.0, %v1824_v24 }
 0x2d3   : > { %v1131_v31 = vsel %vm1130_vm7, %v1822_v12, %v1127_v26  ;;  %v1139_v33 = vmul.f32 %v1826_v27, %v1046_v13  ;;  %vm1144_vm9 = vweird.f32 %v1826_v27  ;;  %v1178_v12 = vpack.c.bf16 %v2386_v25, %v2386_v25 }
 0x2d4   : > { %v1136_v34 = vsel %vm1133_vm8, %v1135_v29, %v1131_v31  ;;  %1827 = vrcp.f32 %v1047_v30  ;;  %vm1145_vm11 = vmor %vm1143_vm10, %vm1144_vm9  ;;  %v1164_v18 = vand.u32 2147483648, %v1047_v30  ;;  %vm1158_vm14 = vweird.f32 %v1047_v30 }
 0x2d5   : > { %v1173_v36 = vmul.f32 %v1136_v34, %v2393_v38  ;;  %v1140_v37 = vsub.f32 1.0, %v1139_v33  ;;  %v1162_v38 = vand.u32 2147483647, %v1047_v30  ;;  %v1210_v59 = vunpack.c.l.b16 %v1178_v12 }
 0x2d6   : > { %v1165_v55 = vor.u32 1.1754944e-38, %v1164_v18 }
 0x2d7   : > { %v1629_v2 = vpack.c.bf16 %v1173_v36, %v1172_v35  ;;  %v1141_v40 = vmul.f32 %v1826_v27, %v1140_v37  ;;  %vm1163_vm0 = vcmp.eq.f32.partialorder %v1162_v38, 8.507059e+37  ;;  %v1183_v63 = vpack.c.bf16 %v1173_v36, %v1173_v36 }
 0x2d9   : > { %1637 = vst [vmem:[%s2172_s13 + $0x10] sm:$0xff] %v1629_v2   ;;  %v1142_v41 = vadd.f32 %v1826_v27, %v1141_v40  ;;  %v1215_v8 = vunpack.c.l.b16 %v1183_v63 }
 0x2da   : > { %v1828_v44 = vpop.eup %1827 }
 0x2db   : > { %v1146_v45 = vsel %vm1145_vm11, %v1826_v27, %v1142_v41  ;;  %v1154_v46 = vmul.f32 %v1828_v44, %v1047_v30  ;;  %vm1159_vm13 = vweird.f32 %v1828_v44  ;;  %v1220_v49 = vpack.c.b16 %v1215_v8, %v1214_v39 }
 0x2dc   : > { %v1151_v51 = vsel %vm1148_vm12, %v1150_v47, %v1146_v45  ;;  %vm1160_vm15 = vmor %vm1158_vm14, %vm1159_vm13 }
 0x2dd   : > { %v1155_v48 = vsub.f32 1.0, %v1154_v46  ;;  %v1174_v53 = vmul.f32 %v1151_v51, %v2410_v56  ;;  %v1181_v56 = vpack.c.bf16 %v2418_v7, %v2418_v7  ;;  %v1211_v7 = vunpack.c.l.b16 %v1179_v10 }
 0x2df   : > { %v1156_v52 = vmul.f32 %v1828_v44, %v1155_v48  ;;  %v1184_v60 = vpack.c.bf16 %v1174_v53, %v1174_v53  ;;  %v1218_v14 = vpack.c.b16 %v1211_v7, %v1210_v59 }
 0x2e1   : > { %v1157_v54 = vadd.f32 %v1828_v44, %v1156_v52  ;;  %v1216_v0 = vunpack.c.l.b16 %v1184_v60 }
 0x2e3   : > { %v1161_v57 = vsel %vm1160_vm15, %v1828_v44, %v1157_v54 }
 0x2e4   : > { %v1166_v42 = vsel %vm1163_vm0, %v1165_v55, %v1161_v57 }
 0x2e5   : > { %v1175_v58 = vmul.f32 %v1166_v42, %v2423_v9  ;;  %v1213_v9 = vunpack.c.l.b16 %v1181_v56 }
 0x2e7   : > { %v1634_v61 = vpack.c.bf16 %v1175_v58, %v1174_v53  ;;  %v1185_v62 = vpack.c.bf16 %v1175_v58, %v1175_v58  ;;  %v1219_v13 = vpack.c.b16 %v1213_v9, %v1212_v11 }
 0x2e9   : > { %1638 = vst [vmem:[%s2172_s13 + $0x18] sm:$0xff] %v1634_v61   ;;  %v1217_v1 = vunpack.c.l.b16 %v1185_v62 }
 0x2eb   : > { %v1221_v4 = vpack.c.b16 %v1217_v1, %v1216_v0 }
 0x2ed   : > { %1234 = vmatpush.bf16.msrb.mxu3 %v1221_v4 }
 0x2f1   : > { %1235 = vmatpush.bf16.msrb.mxu3 %v1220_v49 }
 0x2f5   : > { %1236 = vmatpush.bf16.msrb.mxu3 %v1219_v13 }
 0x2f9   : > { %1237 = vmatpush.bf16.msrb.mxu3 %v1218_v14 }
 0x2fc   : > { %1567 = vmatmul.msk.bf16.vlgmr.msrb.gmra.mxu3 %vm1226_vm1, %v1194_v6 }
 0x2fd   : > { %1856 = shalt.err (!%p1853_p1)
}
 0x2fe   : > { %s1985_s13 = smov 64   ;;  %s1986_s7 = smov 4   ;;  %v1176_v25 = vld [vmem:[%s2170_s14] sm:$0xff]  ;;  %v1177_v15 = vld [vmem:[%s2170_s14 + $0x8] sm:$0xff] }
 0x2ff   : > { %1648 = dma.vmem_to_hbm [thread:$0]  (%p2137_p11), %s1294_s22, 512, %s1296_s19, %s1262_s20, %s1985_s13, %s1985_s13, %s1986_s7  }
 0x300   : > { %s1604_s0 = sshll.u32 %s1967_s12, 4  ;;  %s2575_s30 = sld [smem:[#allocation21_spill]] }
 0x301   : > { %s1274_s16 = sshll.u32 %s2170_s14, 4  ;;  %s2578_s6 = sand.u32 1, %s1955_s9   ;;  %s1275_s16 = int_to_ptr.vmem [resolvable:$true] %s1274_s16 }
 0x302   : > { %s1257_s22 = scalar_lea.sflag [#allocation5], %s2578_s6 }
 0x306   : > { %s2576_s25 = smov %s2575_s30  ;;  %s1273_s11 = scalar_lea.hbm %s2575_s30, %s1604_s0 }
 0x307   : > { %s1276_s23 = sshll.u32 %s1273_s11, 4  ;;  %s1877_s13 = scalar_lea.hbm %s2576_s25, 32  ;;  %s1277_s23 = int_to_ptr.hbm [resolvable:$true] %s1276_s23 }
 0x308   : > { %s1871_s19 = sshra.s32 %s1277_s23, 4  ;;  %s1872_s19 = int_to_ptr.hbm [resolvable:$true] %s1871_s19 }
 0x309   : > { %s1873_s12 = scalar_lea.hbm %s1872_s19, 16  ;;  %p1878_p5 = scmp.lt.s32.totalorder %s1872_s19, %s2576_s25 }
 0x30a   : > { %p1874_p11 = scmp.ne.s32.totalorder %s1872_s19, %s1873_s12  ;;  %p1879_p6 = scmp.lt.s32.totalorder %s1877_s13, %s1873_s12 }
 0x30c   : > { %p1875_p4 = pnand %p1874_p11, %p2105_p3  ;;  %p1880_p8 = por %p1879_p6, %p1878_p5 }
 0x30e   : > { %p1876_p2 = pneg %p1875_p4 }
 0x310   : > { %p1881_p9 = pnand %p1880_p8, %p1876_p2 }
 0x37f   : > { %v1239_v32 = vpop.f32.mrf.mxu3 }
 0x380   : > { %v1244_v5 = vadd.f32 %v1239_v32, %v1176_v25 }
 0x382   : > { %1246 = vst [vmem:[%s2170_s14] sm:$0xff] %v1244_v5 }
 0x387   : > { %v1241_v16 = vpop.f32.mrf.mxu3 }
 0x388   : > { %v1245_v50 = vadd.f32 %v1241_v16, %v1177_v15 }
 0x38a   : > { %1247 = vst [vmem:[%s2170_s14 + $0x8] sm:$0xff] %v1245_v50 }
 0x38b   : > { %1884 = shalt.err (!%p1881_p9)
}
 0x38c   : > { %s1987_s14 = smov 128   ;;  %s1988_s1 = smov 8  }
 0x38d   : > { %1647 = dma.vmem_to_hbm [thread:$0]  (%p2105_p3), %s1275_s16, 256, %s1277_s23, %s1257_s22, %s1987_s14, %s1987_s14, %s1988_s1  }
 0x38e PF: > { %s2579_s18 = sld [smem:[#allocation10_spill]]  ;;  %p1658_p10 = scmp.ge.s32.totalorder %s1979_s15, 2 }
 0x390   : > { %p1652_p12 = pnand %p1658_p10, %p2121_p7 }
 0x392   : > { %p1653_p13 = pneg %p1652_p12 }
 0x394   : > { %s1310_s30 = sand.u32 1, %s2579_s18  }
 0x395   : > { %s1311_s11 = scalar_lea.sflag [#allocation5], %s1310_s30 }
 0x396   : > { %1930 = dma.done.wait (%p1653_p13), %s1311_s11, 256  }
 0x397   : > { %1932 = vsyncadd (%p1653_p13), %s1311_s11, 4294967040  ;;  %s1320_s6 = sand.u32 1, %s1939_s27   ;;  %p1655_p1 = pnand %p1658_p10, %p2149_p0 }
 0x398   : > { %s1321_s21 = scalar_lea.sflag [#allocation7], %s1320_s6 }
 0x399   : > { %p1656_p11 = pneg %p1655_p1 }
 0x39b   : > { %1934 = dma.done.wait (%p1656_p11), %s1321_s21, 512  }
 0x39c   : > { %1936 = vsyncadd (%p1656_p11), %s1321_s21, 4294966784  ;;  %s25_s15 = sadd.s32 1, %s1979_s15   ;;  %s2580_s26 = sld [smem:[#allocation16_spill]] }
 0x39d   : > { %p22_p3 = scmp.ge.s32.totalorder %s25_s15, 6   ;;  %s2581_s11 = sld [smem:[#allocation11_spill]] }
 0x39e   : > { %s2582_s12 = sld [smem:[#allocation12_spill]]  ;;  %s2585_s27 = smov %s1943_s28 }
 0x39f   : > { %s2583_s13 = sld [smem:[#allocation13_spill]]  ;;  %s2586_s28 = smov %s1947_s29 }
 0x3a0   : > { %s2584_s14 = sld [smem:[#allocation15_spill]]  ;;  %s2587_s29 = smov %s2145_s4 }
 0x3a1   : > { %s2588_s30 = smov %s1955_s9  ;;  %s2589_s9 = smov %s1959_s10 }
 0x3a2   : > { %s2590_s10 = smov %s2580_s26  ;;  %24 = sbr.rel (!%p22_p3) target bundleno = 16 (0x10), region = 104 }
 0x3a7   :  { %1327 = vsyncpa [#allocation5], 1 }
 0x3a8   :  { %1329 = vsyncpa [#allocation5 + $0x1], 1 }
 0x3a9   :  { %1330 = vsyncpa [#allocation7], 1 }
 0x3aa   :  { %1332 = vsyncpa [#allocation7 + $0x1], 1 }

</bundles_post_ra>
